<compile_context>
chip_gen: v7x
topology: tpu7x:2x2x1
jax: 0.10.0
libtpu: 0.0.40
codegen_flags: <defaults>
</compile_context>

<pallas_src>
import math
import functools

import jax
import jax.numpy as jnp
from jax.experimental import pallas as pl
from jax.experimental.pallas import tpu as pltpu


def _build_pe_table(d_model: int, max_len: int, dtype=jnp.float32) -> jnp.ndarray:
    """Replicates the PyTorch __init__ buffer (shape: [max_len, d_model]).

    Build this ONCE at model init, already in the activation dtype, so the
    forward path never pays a slice/cast HBM pass.
    """
    position = jnp.arange(0, max_len, dtype=jnp.float32)[:, None]             # (max_len, 1)
    div_term = jnp.exp(
        jnp.arange(0, d_model, 2, dtype=jnp.float32) * -(math.log(10000.0) / d_model)
    )                                                                          # (ceil(d/2),)
    pe = jnp.zeros((max_len, d_model), dtype=jnp.float32)
    pe = pe.at[:, 0::2].set(jnp.sin(position * div_term))
    # guard odd d_model: cos columns are floor(d/2) wide
    pe = pe.at[:, 1::2].set(jnp.cos(position * div_term[: d_model // 2]))
    return pe.astype(dtype)


def _pos_enc_kernel(x_ref, pe_ref, o_ref, *, scale):
    # x_ref/o_ref: (BB, TR, D); pe_ref: (TR, D) broadcast over the batch block.
    o_ref[...] = x_ref[...] * scale + pe_ref[...][None, :, :]


_TARGET_BLOCK_BYTES = 6 * 1024 * 1024  # ~6 MiB per x/out block


def _pick_tiles(N: int, T: int, D: int, itemsize: int,
                target_bytes: int = _TARGET_BLOCK_BYTES) -> tuple[int, int]:
    """Pick (batch_tile, time_tile) so a block is ~target_bytes with minimal padding."""
    row_bytes = max(1, D * itemsize)
    max_rows = max(8, target_bytes // row_bytes)

    if T <= max_rows:
        tr = T  # full time dim: allowed even if not a multiple of 8
    else:
        # multiple of 8 <= max_rows, minimizing tail padding; ties -> larger TR
        tr, best_waste = 8, (-T) % 8
        cand = 16
        while cand <= max_rows:
            waste = (-T) % cand
            if waste <= best_waste:
                tr, best_waste = cand, waste
            cand += 8

    # Batch block: grow per-step bytes toward target; prefer divisors of N so
    # the tail batch block carries no padded traffic (ties -> larger BB).
    bb_cap = min(N, max(1, target_bytes // max(1, tr * row_bytes)))
    bb, best_moved = 1, N
    for cand in range(1, bb_cap + 1):
        moved = (-(-N // cand)) * cand  # total rows DMA'd incl. tail padding
        if moved <= best_moved:
            bb, best_moved = cand, moved
    return bb, tr


def positional_encoding(x: jnp.ndarray, pe_table: jnp.ndarray, d_model: int,
                        time_tile: int | None = None,
                        batch_tile: int | None = None) -> jnp.ndarray:
    """x: (N, T, D); pe_table: (max_len, D). Returns x * sqrt(d_model) + pe[:T]."""
    N, T, D = x.shape
    assert D == d_model
    assert T <= pe_table.shape[0]
    scale = float(d_model) ** 0.5

    # pe_table should already be in x.dtype (cached at init); only cast as a
    # fallback so we never emit a per-call copy on the fast path.
    if pe_table.dtype != x.dtype:
        pe_table = pe_table.astype(x.dtype)

    itemsize = jnp.dtype(x.dtype).itemsize
    bb, tr = _pick_tiles(N, T, D, itemsize)
    if time_tile is not None:
        tr = min(time_tile, T)
    if batch_tile is not None:
        bb = min(batch_tile, N)
    num_t = pl.cdiv(T, tr)
    num_b = pl.cdiv(N, bb)

    # Live VMEM: x + out double-buffered, pe double-buffered, + compiler margin.
    x_block = bb * tr * D * itemsize
    pe_block = tr * D * itemsize
    live = 4 * x_block + 2 * pe_block
    vmem_limit = int(min(max(live + (4 << 20), 16 << 20), 48 << 20))  # <= 48 MiB for v7x's 64 MiB/TC

    kernel = functools.partial(_pos_enc_kernel, scale=scale)

    return pl.pallas_call(
        kernel,
        out_shape=jax.ShapeDtypeStruct((N, T, D), x.dtype),
        grid_spec=pltpu.PrefetchScalarGridSpec(
            num_scalar_prefetch=0,
            # t outer, b inner: the pe block index is constant across the inner
            # batch steps, so each pe tile is DMA'd once and reused num_b times.
            grid=(num_t, num_b),
            in_specs=[
                pl.BlockSpec((bb, tr, D), lambda t, b: (b, t, 0)),
                pl.BlockSpec((tr, D), lambda t, b: (t, 0)),
            ],
            out_specs=pl.BlockSpec((bb, tr, D), lambda t, b: (b, t, 0)),
        ),
        compiler_params=pltpu.CompilerParams(
            dimension_semantics=("parallel", "parallel"),
            vmem_limit_bytes=vmem_limit,
        ),
    )(x, pe_table)


if __name__ == "__main__":
    key = jax.random.PRNGKey(0)

    # --- Check 1: small shapes consistent with forward(): N x T x D ---------
    N, T, D = 2, 8, 32
    MAX_LEN = 64
    x = jax.random.normal(key, (N, T, D), dtype=jnp.float32)
    pe_table = _build_pe_table(d_model=D, max_len=MAX_LEN)

    out = jax.block_until_ready(positional_encoding(x, pe_table, d_model=D))
    ref = x * (D ** 0.5) + pe_table[None, :T, :]
    assert out.shape == (N, T, D)
    assert jnp.allclose(out, ref, atol=1e-5, rtol=1e-5)

    # --- Check 2: lane-dense D=128, batch-blocked with a ragged batch tail ---
    N2, T2, D2 = 3, 24, 128
    x2 = jax.random.normal(jax.random.PRNGKey(1), (N2, T2, D2), dtype=jnp.float32)
    pe2 = _build_pe_table(d_model=D2, max_len=64)
    out2 = jax.block_until_ready(
        positional_encoding(x2, pe2, d_model=D2, time_tile=8, batch_tile=2))
    ref2 = x2 * (D2 ** 0.5) + pe2[None, :T2, :]
    assert jnp.allclose(out2, ref2, atol=1e-5, rtol=1e-5)

    # --- Check 3: T not divisible by the time tile (padded tail time block) --
    N3, T3, D3 = 2, 20, 128
    x3 = jax.random.normal(jax.random.PRNGKey(2), (N3, T3, D3), dtype=jnp.float32)
    pe3 = _build_pe_table(d_model=D3, max_len=64)
    out3 = jax.block_until_ready(positional_encoding(x3, pe3, d_model=D3, time_tile=8))
    ref3 = x3 * (D3 ** 0.5) + pe3[None, :T3, :]
    assert jnp.allclose(out3, ref3, atol=1e-5, rtol=1e-5)

    # --- Check 4: bf16 activations with a dtype-matched cached pe table ------
    N4, T4, D4 = 2, 16, 128
    x4 = jax.random.normal(jax.random.PRNGKey(3), (N4, T4, D4), dtype=jnp.bfloat16)
    pe4 = _build_pe_table(d_model=D4, max_len=64, dtype=jnp.bfloat16)
    out4 = jax.block_until_ready(positional_encoding(x4, pe4, d_model=D4))
    ref4 = x4.astype(jnp.float32) * (D4 ** 0.5) + pe4.astype(jnp.float32)[None, :T4, :]
    assert jnp.allclose(out4.astype(jnp.float32), ref4, atol=0.5, rtol=2e-2)

    print("KERNEL_OK")
</pallas_src>

<mosaic_0001>
module attributes {stable_mosaic.version = 11 : i64} {
  func.func @_pos_enc_kernel(%arg0: i32, %arg1: i32, %arg2: memref<2x8x32xf32, #tpu.memory_space<vmem>>, %arg3: memref<8x32xf32, #tpu.memory_space<vmem>>, %arg4: memref<2x8x32xf32, #tpu.memory_space<vmem>>) attributes {dimension_semantics = [#tpu.dimension_semantics<parallel>, #tpu.dimension_semantics<parallel>], iteration_bounds = array<i64: 1, 1>, scalar_prefetch = 0 : i64, scratch_operands = 0 : i64, tpu.core_type = #tpu.core_type<tc>, window_params = [{transform_indices = @transform_0, window_bounds = array<i64: 2, 8, 32>}, {transform_indices = @transform_1, window_bounds = array<i64: 8, 32>}, {transform_indices = @transform_2, window_bounds = array<i64: 2, 8, 32>}]} {
    %c0 = arith.constant 0 : index
    %c0_0 = arith.constant 0 : index
    %c0_1 = arith.constant 0 : index
    %0 = vector.load %arg2[%c0, %c0_0, %c0_1] : memref<2x8x32xf32, #tpu.memory_space<vmem>>, vector<2x8x32xf32>
    %cst = arith.constant 5.65685415 : f32
    %1 = vector.broadcast %cst : f32 to vector<2x8x32xf32>
    %2 = arith.mulf %0, %1 : vector<2x8x32xf32>
    %c0_2 = arith.constant 0 : index
    %c0_3 = arith.constant 0 : index
    %3 = vector.load %arg3[%c0_2, %c0_3] : memref<8x32xf32, #tpu.memory_space<vmem>>, vector<8x32xf32>
    %4 = vector.shape_cast %3 : vector<8x32xf32> to vector<1x8x32xf32>
    %5 = vector.broadcast %4 : vector<1x8x32xf32> to vector<2x8x32xf32>
    %6 = arith.addf %2, %5 : vector<2x8x32xf32>
    %c0_4 = arith.constant 0 : index
    %c0_5 = arith.constant 0 : index
    %c0_6 = arith.constant 0 : index
    %7 = vector.load %arg4[%c0_4, %c0_5, %c0_6] : memref<2x8x32xf32, #tpu.memory_space<vmem>>, vector<2x8x32xf32>
    tpu.vector_store %arg4[%c0_4, %c0_5, %c0_6], %6 {strides = array<i32>} : memref<2x8x32xf32, #tpu.memory_space<vmem>>, vector<2x8x32xf32>,
    return
  }
  func.func @transform_0(%arg0: i32, %arg1: i32) -> (i32, i32, i32) {
    %c0_i32 = arith.constant 0 : i32
    %c0_i32_0 = arith.constant 0 : i32
    return %arg1, %arg0, %c0_i32 : i32, i32, i32
  }
  func.func @transform_1(%arg0: i32, %arg1: i32) -> (i32, i32) {
    %c0_i32 = arith.constant 0 : i32
    %c0_i32_0 = arith.constant 0 : i32
    return %arg0, %c0_i32 : i32, i32
  }
  func.func @transform_2(%arg0: i32, %arg1: i32) -> (i32, i32, i32) {
    %c0_i32 = arith.constant 0 : i32
    %c0_i32_0 = arith.constant 0 : i32
    return %arg1, %arg0, %c0_i32 : i32, i32, i32
  }
}

</mosaic_0001>

<bundles_post_ra>
// kernel: tpu_custom_call.1
= control target key start
LH: loop header
LB: loop body
LE: loop exit
PB: predicated region body
PF: predicated region fallthrough
CT: control target
= control target key end

     0   :  { %s104_s0 = inlined_call_operand.vmem [shape: f32[2,8,32], index: 0, kind: input, shape index: {}]   ;;  %s105_s1 = inlined_call_operand.vmem [shape: f32[64,32], index: 1, kind: input, shape index: {}]   ;;  %s106_s2 = inlined_call_operand.hbm [shape: f32[2,8,32], index: 2, kind: output, shape index: {}]  }
   0x1   :  { %v12_v0 = vld [vmem:[%s104_s0] sm:$0xff]  ;;  %v13_v2 = vld [vmem:[%s104_s0 + $0x8] sm:$0xff] }
   0x2   :  { %v16_v1 = vld [vmem:[%s105_s1] sm:$0xff]  ;;  %v14_v3 = vmul.f32 5.656854, %v12_v0  ;;  %v15_v4 = vmul.f32 5.656854, %v13_v2 }
   0x3   :  { %7 = vsyncpa [#allocation3], 0  ;;  %vm19_vm0 = vcmask 261120   ;;  %s65_s15 = smov [#allocation2]  }
   0x4   :  { %s27_s16 = sshll.u32 %s65_s15, 4  ;;  %v17_v5 = vadd.f32 %v16_v1, %v14_v3  ;;  %v18_v6 = vadd.f32 %v16_v1, %v15_v4  ;;  %s28_s16 = int_to_ptr.vmem [resolvable:$true] %s27_s16 }
   0x5   :  { %s41_s17 = scalar_lea.vmem %s28_s16, 256  ;;  %p46_p1 = scmp.lt.s32.totalorder %s28_s16, %s28_s16 }
   0x6   :  { %20 = vst.msk [vmem:[#allocation2] sm:$0xff] %vm19_vm0, %v17_v5  ;;  %21 = vst.msk [vmem:[#allocation2 + $0x8] sm:$0xff] %vm19_vm0, %v18_v6  ;;  %p42_p0 = scmp.ne.s32.totalorder %s28_s16, %s41_s17  ;;  %p47_p2 = scmp.lt.s32.totalorder %s41_s17, %s41_s17 }
   0x8   :  { %p48_p3 = por %p47_p2, %p46_p1 }
   0xa   :  { %p49_p4 = pnand %p48_p3, %p42_p0 }
   0xc   :  { %52 = shalt.err (!%p49_p4)
}
   0xd   :  { %s53_s18 = scalar_lea.hbm %s106_s2, 256 }
   0xe   :  { %p54_p5 = scmp.ne.s32.totalorder %s106_s2, %s53_s18  ;;  %p57_p6 = scmp.lt.u32.totalorder %s53_s18, %s106_s2 }
  0x10   :  { %p59_p7 = pnand %p57_p6, %p54_p5 }
  0x12   :  { %62 = shalt.err (!%p59_p7)
}
  0x13   :  { %s66_s23 = smov 128   ;;  %s67_s24 = smov 8  }
  0x14   :  { %33 = dma.vmem_to_hbm [thread:$0]  %s28_s16, 256, %s106_s2, [#allocation3], %s66_s23, %s66_s23, %s67_s24  }
  0x15   :  { %63 = dma.done.wait [#allocation3], 256  }
  0x16   :  { %64 = vsyncadd [#allocation3], 4294967040 }
  0x17   :  { %37 = vsyncpa [#allocation3], 1 }

</bundles_post_ra>
